<compile_context>
chip_gen: v6e
topology: v6e:2x2x1
jax: 0.10.0
libtpu: 0.0.40
codegen_flags: <defaults>
</compile_context>

<pallas_src>
import math
import jax
import jax.numpy as jnp
from jax.experimental import pallas as pl
from jax.experimental.pallas import tpu as pltpu

# ---- model hyper-parameters (small, consistent with the module) ----
BATCH = 2
SEQ = 8
HIDDEN = 32
FFN = 64
HEADS = 4
DK = HIDDEN // HEADS        # att_size
SCALE = DK ** (-0.5)
EPS = 1e-5                  # nn.LayerNorm default
SQRT2 = math.sqrt(2.0)
NEG_INF = -1e30             # masks cross-batch positions in the fused score matrix

# rows of the packed small-vector slab (each row padded to 128 lanes)
(_R_LN1G, _R_LN1B, _R_BQKV, _R_BO, _R_LN2G, _R_LN2B, _R_B1, _R_B2) = range(8)


def encoder_layer_kernel(x_ref, bias_ref, wqkv_ref, wo_ref, w1_ref, w2_ref,
                         vec_ref, out_ref):
    x = x_ref[...].astype(jnp.float32)                         # (B*S, H)
    n = x.shape[0]

    # unpack the small-vector slab (static lane slices of one VMEM tile)
    ln1_g = vec_ref[_R_LN1G:_R_LN1G + 1, :HIDDEN]
    ln1_b = vec_ref[_R_LN1B:_R_LN1B + 1, :HIDDEN]
    bqkv = vec_ref[_R_BQKV:_R_BQKV + 1, :3 * HIDDEN]
    bo = vec_ref[_R_BO:_R_BO + 1, :HIDDEN]
    ln2_g = vec_ref[_R_LN2G:_R_LN2G + 1, :HIDDEN]
    ln2_b = vec_ref[_R_LN2B:_R_LN2B + 1, :HIDDEN]
    b1 = vec_ref[_R_B1:_R_B1 + 1, :FFN]
    b2 = vec_ref[_R_B2:_R_B2 + 1, :HIDDEN]

    # ---- self_attention_norm (LayerNorm over hidden), all B*S rows at once ----
    mu = jnp.mean(x, axis=-1, keepdims=True)
    var = jnp.mean((x - mu) ** 2, axis=-1, keepdims=True)
    y = (x - mu) * jax.lax.rsqrt(var + EPS) * ln1_g + ln1_b

    # ---- fused Q/K/V projection: one MXU push ----
    qkv = jnp.dot(y, wqkv_ref[...], preferred_element_type=jnp.float32) + bqkv  # (B*S, 3H)

    # ---- multi-head self attention (valid=True -> no attn dropout) ----
    dn = (((1,), (1,)), ((), ()))                              # contract last dims (q @ k^T)
    attn_out = jnp.broadcast_to(bo, (n, HIDDEN)).astype(jnp.float32)
    for h in range(HEADS):
        qh = qkv[:, h * DK:(h + 1) * DK] * SCALE               # (B*S, DK)
        kh = qkv[:, HIDDEN + h * DK:HIDDEN + (h + 1) * DK]
        vh = qkv[:, 2 * HIDDEN + h * DK:2 * HIDDEN + (h + 1) * DK]
        s = jax.lax.dot_general(qh, kh, dn,
                                preferred_element_type=jnp.float32)  # (B*S, B*S)
        s = s + bias_ref[h].astype(jnp.float32)                # block-diag bias, cross-batch=-1e30
        s = s - jnp.max(s, axis=-1, keepdims=True)             # stable softmax
        p = jnp.exp(s)
        p = p * pl.reciprocal(jnp.sum(p, axis=-1, keepdims=True), approx=True)
        ctx = jnp.dot(p, vh, preferred_element_type=jnp.float32)      # (B*S, DK)
        attn_out = attn_out + jnp.dot(ctx, wo_ref[h * DK:(h + 1) * DK, :],
                                      preferred_element_type=jnp.float32)

    x1 = x + attn_out                                          # residual 1

    # ---- ffn_norm ----
    mu2 = jnp.mean(x1, axis=-1, keepdims=True)
    var2 = jnp.mean((x1 - mu2) ** 2, axis=-1, keepdims=True)
    y2 = (x1 - mu2) * jax.lax.rsqrt(var2 + EPS) * ln2_g + ln2_b

    # ---- FFN: Linear -> exact (erf) GELU (nn.GELU default) -> Linear ----
    h1 = jnp.dot(y2, w1_ref[...], preferred_element_type=jnp.float32) + b1
    h1 = 0.5 * h1 * (1.0 + jax.lax.erf(h1 / SQRT2))
    ffn_out = jnp.dot(h1, w2_ref[...], preferred_element_type=jnp.float32) + b2

    out_ref[...] = (x1 + ffn_out).astype(out_ref.dtype)        # residual 2


def pack_params(params):
    """One-time packing (call OUTSIDE the hot path): fuse QKV weights and pack the
    ten tiny bias/LayerNorm vectors into one (8, 128) slab."""
    (ln1_g, ln1_b, wq, bq, wk, bk, wv, bv, wo, bo,
     ln2_g, ln2_b, w1, b1, w2, b2) = params
    wqkv = jnp.concatenate([wq, wk, wv], axis=1).astype(jnp.float32)   # (H, 3H)
    rows = [ln1_g, ln1_b,
            jnp.concatenate([bq, bk, bv], axis=1),
            bo, ln2_g, ln2_b, b1, b2]
    vec = jnp.zeros((8, 128), jnp.float32)
    for r, v in enumerate(rows):
        v = v.reshape(-1).astype(jnp.float32)
        vec = vec.at[r, :v.shape[0]].set(v)
    return (wqkv, wo.astype(jnp.float32), w1.astype(jnp.float32),
            w2.astype(jnp.float32), vec)


def encoder_layer(x, attn_bias, packed):
    wqkv, wo, w1, w2, vec = packed
    B, S, H = x.shape
    BS = B * S
    x2d = x.reshape(BS, H)

    # Block-diagonal per-head bias over the flattened (B*S) axis; cross-batch
    # positions get NEG_INF so softmax weights across batches are exactly zero.
    bias_bd = jnp.full((HEADS, BS, BS), NEG_INF, jnp.float32)
    for b in range(B):
        bias_bd = bias_bd.at[:, b * S:(b + 1) * S, b * S:(b + 1) * S].set(
            attn_bias[b].astype(jnp.float32))

    grid_spec = pltpu.PrefetchScalarGridSpec(
        num_scalar_prefetch=0,
        grid=(1,),                                   # single step: everything fits in VMEM
        in_specs=[
            pl.BlockSpec((BS, H), lambda i: (0, 0)),             # x (flattened)
            pl.BlockSpec((HEADS, BS, BS), lambda i: (0, 0, 0)),  # block-diag attn bias
            pl.BlockSpec(wqkv.shape, lambda i: (0, 0)),          # fused QKV weight
            pl.BlockSpec(wo.shape, lambda i: (0, 0)),
            pl.BlockSpec(w1.shape, lambda i: (0, 0)),
            pl.BlockSpec(w2.shape, lambda i: (0, 0)),
            pl.BlockSpec(vec.shape, lambda i: (0, 0)),           # packed bias/LN slab
        ],
        out_specs=pl.BlockSpec((BS, H), lambda i: (0, 0)),
    )

    out2d = pl.pallas_call(
        encoder_layer_kernel,
        out_shape=jax.ShapeDtypeStruct((BS, H), x.dtype),
        grid_spec=grid_spec,
        compiler_params=pltpu.CompilerParams(
            dimension_semantics=("arbitrary",)),
    )(x2d, bias_bd, wqkv, wo, w1, w2, vec)
    return out2d.reshape(B, S, H)


# ----------------- pure-JAX reference (for verification) -----------------
def reference_encoder_layer(x, attn_bias, params):
    (ln1_g, ln1_b, wq, bq, wk, bk, wv, bv, wo, bo,
     ln2_g, ln2_b, w1, b1, w2, b2) = params

    def layernorm(t, g, b):
        mu = jnp.mean(t, axis=-1, keepdims=True)
        var = jnp.mean((t - mu) ** 2, axis=-1, keepdims=True)
        return (t - mu) * jax.lax.rsqrt(var + EPS) * g + b

    y = layernorm(x, ln1_g, ln1_b)
    q = y @ wq + bq
    k = y @ wk + bk
    v = y @ wv + bv
    B, S, H = x.shape
    q = q.reshape(B, S, HEADS, DK).transpose(0, 2, 1, 3) * SCALE
    k = k.reshape(B, S, HEADS, DK).transpose(0, 2, 1, 3)
    v = v.reshape(B, S, HEADS, DK).transpose(0, 2, 1, 3)
    s = jnp.einsum('bhqd,bhkd->bhqk', q, k) + attn_bias
    p = jax.nn.softmax(s, axis=-1)
    ctx = jnp.einsum('bhqk,bhkd->bhqd', p, v)
    ctx = ctx.transpose(0, 2, 1, 3).reshape(B, S, H)
    x1 = x + (ctx @ wo + bo)
    y2 = layernorm(x1, ln2_g, ln2_b)
    h1 = y2 @ w1 + b1
    h1 = 0.5 * h1 * (1.0 + jax.lax.erf(h1 / SQRT2))
    return x1 + (h1 @ w2 + b2)


if __name__ == "__main__":
    key = jax.random.PRNGKey(0)
    keys = jax.random.split(key, 20)

    # deterministic parameter init (weights stored transposed: (in, out))
    ln1_g = 1.0 + 0.1 * jax.random.normal(keys[0], (1, HIDDEN), jnp.float32)
    ln1_b = 0.1 * jax.random.normal(keys[1], (1, HIDDEN), jnp.float32)
    wq = 0.05 * jax.random.normal(keys[2], (HIDDEN, HIDDEN), jnp.float32)
    bq = 0.05 * jax.random.normal(keys[3], (1, HIDDEN), jnp.float32)
    wk = 0.05 * jax.random.normal(keys[4], (HIDDEN, HIDDEN), jnp.float32)
    bk = 0.05 * jax.random.normal(keys[5], (1, HIDDEN), jnp.float32)
    wv = 0.05 * jax.random.normal(keys[6], (HIDDEN, HIDDEN), jnp.float32)
    bv = 0.05 * jax.random.normal(keys[7], (1, HIDDEN), jnp.float32)
    wo = 0.05 * jax.random.normal(keys[8], (HIDDEN, HIDDEN), jnp.float32)
    bo = 0.05 * jax.random.normal(keys[9], (1, HIDDEN), jnp.float32)
    ln2_g = 1.0 + 0.1 * jax.random.normal(keys[10], (1, HIDDEN), jnp.float32)
    ln2_b = 0.1 * jax.random.normal(keys[11], (1, HIDDEN), jnp.float32)
    w1 = 0.05 * jax.random.normal(keys[12], (HIDDEN, FFN), jnp.float32)
    b1 = 0.05 * jax.random.normal(keys[13], (1, FFN), jnp.float32)
    w2 = 0.05 * jax.random.normal(keys[14], (FFN, HIDDEN), jnp.float32)
    b2 = 0.05 * jax.random.normal(keys[15], (1, HIDDEN), jnp.float32)

    params = [ln1_g, ln1_b, wq, bq, wk, bk, wv, bv, wo, bo,
              ln2_g, ln2_b, w1, b1, w2, b2]
    packed = pack_params(params)          # done once, outside the hot path

    x = jax.random.normal(keys[16], (BATCH, SEQ, HIDDEN), jnp.float32)
    attn_bias = 0.1 * jax.random.normal(keys[17], (BATCH, HEADS, SEQ, SEQ),
                                        jnp.float32)

    out = encoder_layer(x, attn_bias, packed)
    out = jax.block_until_ready(out)

    ref = reference_encoder_layer(x, attn_bias, params)
    assert out.shape == x.shape and out.dtype == x.dtype
    # tolerance 1e-3: pl.reciprocal(approx=True) in the softmax denominator adds a
    # small (~1e-4) relative error vs. the exact-divide reference.
    assert jnp.allclose(out, ref, rtol=1e-3, atol=1e-3), "mismatch vs reference"

    print("KERNEL_OK")
</pallas_src>

<mosaic_0001>
module attributes {stable_mosaic.version = 11 : i64} {
  func.func @encoder_layer_kernel(%arg0: i32, %arg1: memref<16x32xf32, #tpu.memory_space<vmem>>, %arg2: memref<4x16x16xf32, #tpu.memory_space<vmem>>, %arg3: memref<32x96xf32, #tpu.memory_space<vmem>>, %arg4: memref<32x32xf32, #tpu.memory_space<vmem>>, %arg5: memref<32x64xf32, #tpu.memory_space<vmem>>, %arg6: memref<64x32xf32, #tpu.memory_space<vmem>>, %arg7: memref<8x128xf32, #tpu.memory_space<vmem>>, %arg8: memref<16x32xf32, #tpu.memory_space<vmem>>) attributes {dimension_semantics = [#tpu.dimension_semantics<arbitrary>], iteration_bounds = array<i64: 1>, scalar_prefetch = 0 : i64, scratch_operands = 0 : i64, tpu.core_type = #tpu.core_type<tc>, window_params = [{pipeline_mode = #tpu.pipeline_mode<synchronous>, transform_indices = @transform_0, window_bounds = array<i64: 16, 32>}, {pipeline_mode = #tpu.pipeline_mode<synchronous>, transform_indices = @transform_1, window_bounds = array<i64: 4, 16, 16>}, {pipeline_mode = #tpu.pipeline_mode<synchronous>, transform_indices = @transform_2, window_bounds = array<i64: 32, 96>}, {pipeline_mode = #tpu.pipeline_mode<synchronous>, transform_indices = @transform_3, window_bounds = array<i64: 32, 32>}, {pipeline_mode = #tpu.pipeline_mode<synchronous>, transform_indices = @transform_4, window_bounds = array<i64: 32, 64>}, {pipeline_mode = #tpu.pipeline_mode<synchronous>, transform_indices = @transform_5, window_bounds = array<i64: 64, 32>}, {pipeline_mode = #tpu.pipeline_mode<synchronous>, transform_indices = @transform_6, window_bounds = array<i64: 8, 128>}, {pipeline_mode = #tpu.pipeline_mode<synchronous>, transform_indices = @transform_7, window_bounds = array<i64: 16, 32>}]} {
    %c0 = arith.constant 0 : index
    %c0_0 = arith.constant 0 : index
    %0 = vector.load %arg1[%c0, %c0_0] : memref<16x32xf32, #tpu.memory_space<vmem>>, vector<16x32xf32>
    %c0_1 = arith.constant 0 : index
    %c0_2 = arith.constant 0 : index
    %1 = vector.load %arg7[%c0_1, %c0_2] : memref<8x128xf32, #tpu.memory_space<vmem>>, vector<1x32xf32>
    %c1 = arith.constant 1 : index
    %c0_3 = arith.constant 0 : index
    %2 = vector.load %arg7[%c1, %c0_3] : memref<8x128xf32, #tpu.memory_space<vmem>>, vector<1x32xf32>
    %c2 = arith.constant 2 : index
    %c0_4 = arith.constant 0 : index
    %3 = vector.load %arg7[%c2, %c0_4] : memref<8x128xf32, #tpu.memory_space<vmem>>, vector<1x96xf32>
    %c3 = arith.constant 3 : index
    %c0_5 = arith.constant 0 : index
    %4 = vector.load %arg7[%c3, %c0_5] : memref<8x128xf32, #tpu.memory_space<vmem>>, vector<1x32xf32>
    %c4 = arith.constant 4 : index
    %c0_6 = arith.constant 0 : index
    %5 = vector.load %arg7[%c4, %c0_6] : memref<8x128xf32, #tpu.memory_space<vmem>>, vector<1x32xf32>
    %c5 = arith.constant 5 : index
    %c0_7 = arith.constant 0 : index
    %6 = vector.load %arg7[%c5, %c0_7] : memref<8x128xf32, #tpu.memory_space<vmem>>, vector<1x32xf32>
    %c6 = arith.constant 6 : index
    %c0_8 = arith.constant 0 : index
    %7 = vector.load %arg7[%c6, %c0_8] : memref<8x128xf32, #tpu.memory_space<vmem>>, vector<1x64xf32>
    %c7 = arith.constant 7 : index
    %c0_9 = arith.constant 0 : index
    %8 = vector.load %arg7[%c7, %c0_9] : memref<8x128xf32, #tpu.memory_space<vmem>>, vector<1x32xf32>
    %cst = arith.constant dense<0.000000e+00> : vector<16xf32>
    %9 = vector.multi_reduction <add>, %0, %cst [1] : vector<16x32xf32> to vector<16xf32>
    %10 = vector.shape_cast %9 : vector<16xf32> to vector<16x1xf32>
    %cst_10 = arith.constant 3.200000e+01 : f32
    %11 = vector.broadcast %cst_10 : f32 to vector<16x1xf32>
    %12 = arith.divf %10, %11 : vector<16x1xf32>
    %13 = vector.broadcast %12 : vector<16x1xf32> to vector<16x32xf32>
    %14 = arith.subf %0, %13 : vector<16x32xf32>
    %15 = arith.mulf %14, %14 : vector<16x32xf32>
    %cst_11 = arith.constant dense<0.000000e+00> : vector<16xf32>
    %16 = vector.multi_reduction <add>, %15, %cst_11 [1] : vector<16x32xf32> to vector<16xf32>
    %17 = vector.shape_cast %16 : vector<16xf32> to vector<16x1xf32>
    %cst_12 = arith.constant 3.200000e+01 : f32
    %18 = vector.broadcast %cst_12 : f32 to vector<16x1xf32>
    %19 = arith.divf %17, %18 : vector<16x1xf32>
    %20 = vector.broadcast %12 : vector<16x1xf32> to vector<16x32xf32>
    %21 = arith.subf %0, %20 : vector<16x32xf32>
    %cst_13 = arith.constant 9.99999974E-6 : f32
    %22 = vector.broadcast %cst_13 : f32 to vector<16x1xf32>
    %23 = arith.addf %19, %22 : vector<16x1xf32>
    %24 = math.rsqrt %23 : vector<16x1xf32>
    %25 = vector.broadcast %24 : vector<16x1xf32> to vector<16x32xf32>
    %26 = arith.mulf %21, %25 : vector<16x32xf32>
    %27 = vector.broadcast %1 : vector<1x32xf32> to vector<16x32xf32>
    %28 = arith.mulf %26, %27 : vector<16x32xf32>
    %29 = vector.broadcast %2 : vector<1x32xf32> to vector<16x32xf32>
    %30 = arith.addf %28, %29 : vector<16x32xf32>
    %c0_14 = arith.constant 0 : index
    %c0_15 = arith.constant 0 : index
    %31 = vector.load %arg3[%c0_14, %c0_15] : memref<32x96xf32, #tpu.memory_space<vmem>>, vector<32x96xf32>
    %cst_16 = arith.constant dense<0.000000e+00> : vector<16x96xf32>
    %32 = tpu.matmul %30, %31, %cst_16 {dimension_numbers = #tpu.dot_dimension_numbers<[1], [0], [0], [1], [0, 0, 1, 1], [], []>} : vector<16x32xf32>, vector<32x96xf32>, vector<16x96xf32> -> vector<16x96xf32>
    %33 = vector.broadcast %3 : vector<1x96xf32> to vector<16x96xf32>
    %34 = arith.addf %32, %33 : vector<16x96xf32>
    %35 = vector.shape_cast %4 : vector<1x32xf32> to vector<1x32xf32>
    %36 = vector.broadcast %35 : vector<1x32xf32> to vector<16x32xf32>
    %37 = vector.extract_strided_slice %34 {offsets = [0, 0], sizes = [16, 8], strides = [1, 1]} : vector<16x96xf32> to vector<16x8xf32>
    %cst_17 = arith.constant 0.353553385 : f32
    %38 = vector.broadcast %cst_17 : f32 to vector<16x8xf32>
    %39 = arith.mulf %37, %38 : vector<16x8xf32>
    %40 = vector.extract_strided_slice %34 {offsets = [0, 32], sizes = [16, 8], strides = [1, 1]} : vector<16x96xf32> to vector<16x8xf32>
    %41 = vector.extract_strided_slice %34 {offsets = [0, 64], sizes = [16, 8], strides = [1, 1]} : vector<16x96xf32> to vector<16x8xf32>
    %cst_18 = arith.constant dense<0.000000e+00> : vector<16x16xf32>
    %42 = tpu.matmul %39, %40, %cst_18 {dimension_numbers = #tpu.dot_dimension_numbers<[1], [1], [0], [0], [0, 0, 1, 0], [], []>} : vector<16x8xf32>, vector<16x8xf32>, vector<16x16xf32> -> vector<16x16xf32>
    %c0_19 = arith.constant 0 : index
    %c0_20 = arith.constant 0 : index
    %c0_21 = arith.constant 0 : index
    %43 = vector.load %arg2[%c0_19, %c0_20, %c0_21] : memref<4x16x16xf32, #tpu.memory_space<vmem>>, vector<1x16x16xf32>
    %44 = vector.shape_cast %43 : vector<1x16x16xf32> to vector<16x16xf32>
    %45 = arith.addf %42, %44 : vector<16x16xf32>
    %cst_22 = arith.constant dense<0xFF800000> : vector<16xf32>
    %46 = vector.multi_reduction <maximumf>, %45, %cst_22 [1] : vector<16x16xf32> to vector<16xf32>
    %47 = vector.shape_cast %46 : vector<16xf32> to vector<16x1xf32>
    %48 = vector.broadcast %47 : vector<16x1xf32> to vector<16x16xf32>
    %49 = arith.subf %45, %48 : vector<16x16xf32>
    %50 = math.exp %49 : vector<16x16xf32>
    %cst_23 = arith.constant dense<0.000000e+00> : vector<16xf32>
    %51 = vector.multi_reduction <add>, %50, %cst_23 [1] : vector<16x16xf32> to vector<16xf32>
    %52 = vector.shape_cast %51 : vector<16xf32> to vector<16x1xf32>
    %53 = tpu.reciprocal %52 {approx = true} : vector<16x1xf32> -> vector<16x1xf32>
    %54 = vector.broadcast %53 : vector<16x1xf32> to vector<16x16xf32>
    %55 = arith.mulf %50, %54 : vector<16x16xf32>
    %cst_24 = arith.constant dense<0.000000e+00> : vector<16x8xf32>
    %56 = tpu.matmul %55, %41, %cst_24 {dimension_numbers = #tpu.dot_dimension_numbers<[1], [0], [0], [1], [0, 0, 1, 1], [], []>} : vector<16x16xf32>, vector<16x8xf32>, vector<16x8xf32> -> vector<16x8xf32>
    %c0_25 = arith.constant 0 : index
    %c0_26 = arith.constant 0 : index
    %57 = vector.load %arg4[%c0_25, %c0_26] : memref<32x32xf32, #tpu.memory_space<vmem>>, vector<8x32xf32>
    %cst_27 = arith.constant dense<0.000000e+00> : vector<16x32xf32>
    %58 = tpu.matmul %56, %57, %cst_27 {dimension_numbers = #tpu.dot_dimension_numbers<[1], [0], [0], [1], [0, 0, 1, 1], [], []>} : vector<16x8xf32>, vector<8x32xf32>, vector<16x32xf32> -> vector<16x32xf32>
    %59 = arith.addf %36, %58 : vector<16x32xf32>
    %60 = vector.extract_strided_slice %34 {offsets = [0, 8], sizes = [16, 8], strides = [1, 1]} : vector<16x96xf32> to vector<16x8xf32>
    %cst_28 = arith.constant 0.353553385 : f32
    %61 = vector.broadcast %cst_28 : f32 to vector<16x8xf32>
    %62 = arith.mulf %60, %61 : vector<16x8xf32>
    %63 = vector.extract_strided_slice %34 {offsets = [0, 40], sizes = [16, 8], strides = [1, 1]} : vector<16x96xf32> to vector<16x8xf32>
    %64 = vector.extract_strided_slice %34 {offsets = [0, 72], sizes = [16, 8], strides = [1, 1]} : vector<16x96xf32> to vector<16x8xf32>
    %cst_29 = arith.constant dense<0.000000e+00> : vector<16x16xf32>
    %65 = tpu.matmul %62, %63, %cst_29 {dimension_numbers = #tpu.dot_dimension_numbers<[1], [1], [0], [0], [0, 0, 1, 0], [], []>} : vector<16x8xf32>, vector<16x8xf32>, vector<16x16xf32> -> vector<16x16xf32>
    %c1_30 = arith.constant 1 : index
    %c0_31 = arith.constant 0 : index
    %c0_32 = arith.constant 0 : index
    %66 = vector.load %arg2[%c1_30, %c0_31, %c0_32] : memref<4x16x16xf32, #tpu.memory_space<vmem>>, vector<1x16x16xf32>
    %67 = vector.shape_cast %66 : vector<1x16x16xf32> to vector<16x16xf32>
    %68 = arith.addf %65, %67 : vector<16x16xf32>
    %cst_33 = arith.constant dense<0xFF800000> : vector<16xf32>
    %69 = vector.multi_reduction <maximumf>, %68, %cst_33 [1] : vector<16x16xf32> to vector<16xf32>
    %70 = vector.shape_cast %69 : vector<16xf32> to vector<16x1xf32>
    %71 = vector.broadcast %70 : vector<16x1xf32> to vector<16x16xf32>
    %72 = arith.subf %68, %71 : vector<16x16xf32>
    %73 = math.exp %72 : vector<16x16xf32>
    %cst_34 = arith.constant dense<0.000000e+00> : vector<16xf32>
    %74 = vector.multi_reduction <add>, %73, %cst_34 [1] : vector<16x16xf32> to vector<16xf32>
    %75 = vector.shape_cast %74 : vector<16xf32> to vector<16x1xf32>
    %76 = tpu.reciprocal %75 {approx = true} : vector<16x1xf32> -> vector<16x1xf32>
    %77 = vector.broadcast %76 : vector<16x1xf32> to vector<16x16xf32>
    %78 = arith.mulf %73, %77 : vector<16x16xf32>
    %cst_35 = arith.constant dense<0.000000e+00> : vector<16x8xf32>
    %79 = tpu.matmul %78, %64, %cst_35 {dimension_numbers = #tpu.dot_dimension_numbers<[1], [0], [0], [1], [0, 0, 1, 1], [], []>} : vector<16x16xf32>, vector<16x8xf32>, vector<16x8xf32> -> vector<16x8xf32>
    %c8 = arith.constant 8 : index
    %c0_36 = arith.constant 0 : index
    %80 = vector.load %arg4[%c8, %c0_36] : memref<32x32xf32, #tpu.memory_space<vmem>>, vector<8x32xf32>
    %cst_37 = arith.constant dense<0.000000e+00> : vector<16x32xf32>
    %81 = tpu.matmul %79, %80, %cst_37 {dimension_numbers = #tpu.dot_dimension_numbers<[1], [0], [0], [1], [0, 0, 1, 1], [], []>} : vector<16x8xf32>, vector<8x32xf32>, vector<16x32xf32> -> vector<16x32xf32>
    %82 = arith.addf %59, %81 : vector<16x32xf32>
    %83 = vector.extract_strided_slice %34 {offsets = [0, 16], sizes = [16, 8], strides = [1, 1]} : vector<16x96xf32> to vector<16x8xf32>
    %cst_38 = arith.constant 0.353553385 : f32
    %84 = vector.broadcast %cst_38 : f32 to vector<16x8xf32>
    %85 = arith.mulf %83, %84 : vector<16x8xf32>
    %86 = vector.extract_strided_slice %34 {offsets = [0, 48], sizes = [16, 8], strides = [1, 1]} : vector<16x96xf32> to vector<16x8xf32>
    %87 = vector.extract_strided_slice %34 {offsets = [0, 80], sizes = [16, 8], strides = [1, 1]} : vector<16x96xf32> to vector<16x8xf32>
    %cst_39 = arith.constant dense<0.000000e+00> : vector<16x16xf32>
    %88 = tpu.matmul %85, %86, %cst_39 {dimension_numbers = #tpu.dot_dimension_numbers<[1], [1], [0], [0], [0, 0, 1, 0], [], []>} : vector<16x8xf32>, vector<16x8xf32>, vector<16x16xf32> -> vector<16x16xf32>
    %c2_40 = arith.constant 2 : index
    %c0_41 = arith.constant 0 : index
    %c0_42 = arith.constant 0 : index
    %89 = vector.load %arg2[%c2_40, %c0_41, %c0_42] : memref<4x16x16xf32, #tpu.memory_space<vmem>>, vector<1x16x16xf32>
    %90 = vector.shape_cast %89 : vector<1x16x16xf32> to vector<16x16xf32>
    %91 = arith.addf %88, %90 : vector<16x16xf32>
    %cst_43 = arith.constant dense<0xFF800000> : vector<16xf32>
    %92 = vector.multi_reduction <maximumf>, %91, %cst_43 [1] : vector<16x16xf32> to vector<16xf32>
    %93 = vector.shape_cast %92 : vector<16xf32> to vector<16x1xf32>
    %94 = vector.broadcast %93 : vector<16x1xf32> to vector<16x16xf32>
    %95 = arith.subf %91, %94 : vector<16x16xf32>
    %96 = math.exp %95 : vector<16x16xf32>
    %cst_44 = arith.constant dense<0.000000e+00> : vector<16xf32>
    %97 = vector.multi_reduction <add>, %96, %cst_44 [1] : vector<16x16xf32> to vector<16xf32>
    %98 = vector.shape_cast %97 : vector<16xf32> to vector<16x1xf32>
    %99 = tpu.reciprocal %98 {approx = true} : vector<16x1xf32> -> vector<16x1xf32>
    %100 = vector.broadcast %99 : vector<16x1xf32> to vector<16x16xf32>
    %101 = arith.mulf %96, %100 : vector<16x16xf32>
    %cst_45 = arith.constant dense<0.000000e+00> : vector<16x8xf32>
    %102 = tpu.matmul %101, %87, %cst_45 {dimension_numbers = #tpu.dot_dimension_numbers<[1], [0], [0], [1], [0, 0, 1, 1], [], []>} : vector<16x16xf32>, vector<16x8xf32>, vector<16x8xf32> -> vector<16x8xf32>
    %c16 = arith.constant 16 : index
    %c0_46 = arith.constant 0 : index
    %103 = vector.load %arg4[%c16, %c0_46] : memref<32x32xf32, #tpu.memory_space<vmem>>, vector<8x32xf32>
    %cst_47 = arith.constant dense<0.000000e+00> : vector<16x32xf32>
    %104 = tpu.matmul %102, %103, %cst_47 {dimension_numbers = #tpu.dot_dimension_numbers<[1], [0], [0], [1], [0, 0, 1, 1], [], []>} : vector<16x8xf32>, vector<8x32xf32>, vector<16x32xf32> -> vector<16x32xf32>
    %105 = arith.addf %82, %104 : vector<16x32xf32>
    %106 = vector.extract_strided_slice %34 {offsets = [0, 24], sizes = [16, 8], strides = [1, 1]} : vector<16x96xf32> to vector<16x8xf32>
    %cst_48 = arith.constant 0.353553385 : f32
    %107 = vector.broadcast %cst_48 : f32 to vector<16x8xf32>
    %108 = arith.mulf %106, %107 : vector<16x8xf32>
    %109 = vector.extract_strided_slice %34 {offsets = [0, 56], sizes = [16, 8], strides = [1, 1]} : vector<16x96xf32> to vector<16x8xf32>
    %110 = vector.extract_strided_slice %34 {offsets = [0, 88], sizes = [16, 8], strides = [1, 1]} : vector<16x96xf32> to vector<16x8xf32>
    %cst_49 = arith.constant dense<0.000000e+00> : vector<16x16xf32>
    %111 = tpu.matmul %108, %109, %cst_49 {dimension_numbers = #tpu.dot_dimension_numbers<[1], [1], [0], [0], [0, 0, 1, 0], [], []>} : vector<16x8xf32>, vector<16x8xf32>, vector<16x16xf32> -> vector<16x16xf32>
    %c3_50 = arith.constant 3 : index
    %c0_51 = arith.constant 0 : index
    %c0_52 = arith.constant 0 : index
    %112 = vector.load %arg2[%c3_50, %c0_51, %c0_52] : memref<4x16x16xf32, #tpu.memory_space<vmem>>, vector<1x16x16xf32>
    %113 = vector.shape_cast %112 : vector<1x16x16xf32> to vector<16x16xf32>
    %114 = arith.addf %111, %113 : vector<16x16xf32>
    %cst_53 = arith.constant dense<0xFF800000> : vector<16xf32>
    %115 = vector.multi_reduction <maximumf>, %114, %cst_53 [1] : vector<16x16xf32> to vector<16xf32>
    %116 = vector.shape_cast %115 : vector<16xf32> to vector<16x1xf32>
    %117 = vector.broadcast %116 : vector<16x1xf32> to vector<16x16xf32>
    %118 = arith.subf %114, %117 : vector<16x16xf32>
    %119 = math.exp %118 : vector<16x16xf32>
    %cst_54 = arith.constant dense<0.000000e+00> : vector<16xf32>
    %120 = vector.multi_reduction <add>, %119, %cst_54 [1] : vector<16x16xf32> to vector<16xf32>
    %121 = vector.shape_cast %120 : vector<16xf32> to vector<16x1xf32>
    %122 = tpu.reciprocal %121 {approx = true} : vector<16x1xf32> -> vector<16x1xf32>
    %123 = vector.broadcast %122 : vector<16x1xf32> to vector<16x16xf32>
    %124 = arith.mulf %119, %123 : vector<16x16xf32>
    %cst_55 = arith.constant dense<0.000000e+00> : vector<16x8xf32>
    %125 = tpu.matmul %124, %110, %cst_55 {dimension_numbers = #tpu.dot_dimension_numbers<[1], [0], [0], [1], [0, 0, 1, 1], [], []>} : vector<16x16xf32>, vector<16x8xf32>, vector<16x8xf32> -> vector<16x8xf32>
    %c24 = arith.constant 24 : index
    %c0_56 = arith.constant 0 : index
    %126 = vector.load %arg4[%c24, %c0_56] : memref<32x32xf32, #tpu.memory_space<vmem>>, vector<8x32xf32>
    %cst_57 = arith.constant dense<0.000000e+00> : vector<16x32xf32>
    %127 = tpu.matmul %125, %126, %cst_57 {dimension_numbers = #tpu.dot_dimension_numbers<[1], [0], [0], [1], [0, 0, 1, 1], [], []>} : vector<16x8xf32>, vector<8x32xf32>, vector<16x32xf32> -> vector<16x32xf32>
    %128 = arith.addf %105, %127 : vector<16x32xf32>
    %129 = arith.addf %0, %128 : vector<16x32xf32>
    %cst_58 = arith.constant dense<0.000000e+00> : vector<16xf32>
    %130 = vector.multi_reduction <add>, %129, %cst_58 [1] : vector<16x32xf32> to vector<16xf32>
    %131 = vector.shape_cast %130 : vector<16xf32> to vector<16x1xf32>
    %cst_59 = arith.constant 3.200000e+01 : f32
    %132 = vector.broadcast %cst_59 : f32 to vector<16x1xf32>
    %133 = arith.divf %131, %132 : vector<16x1xf32>
    %134 = vector.broadcast %133 : vector<16x1xf32> to vector<16x32xf32>
    %135 = arith.subf %129, %134 : vector<16x32xf32>
    %136 = arith.mulf %135, %135 : vector<16x32xf32>
    %cst_60 = arith.constant dense<0.000000e+00> : vector<16xf32>
    %137 = vector.multi_reduction <add>, %136, %cst_60 [1] : vector<16x32xf32> to vector<16xf32>
    %138 = vector.shape_cast %137 : vector<16xf32> to vector<16x1xf32>
    %cst_61 = arith.constant 3.200000e+01 : f32
    %139 = vector.broadcast %cst_61 : f32 to vector<16x1xf32>
    %140 = arith.divf %138, %139 : vector<16x1xf32>
    %141 = vector.broadcast %133 : vector<16x1xf32> to vector<16x32xf32>
    %142 = arith.subf %129, %141 : vector<16x32xf32>
    %cst_62 = arith.constant 9.99999974E-6 : f32
    %143 = vector.broadcast %cst_62 : f32 to vector<16x1xf32>
    %144 = arith.addf %140, %143 : vector<16x1xf32>
    %145 = math.rsqrt %144 : vector<16x1xf32>
    %146 = vector.broadcast %145 : vector<16x1xf32> to vector<16x32xf32>
    %147 = arith.mulf %142, %146 : vector<16x32xf32>
    %148 = vector.broadcast %5 : vector<1x32xf32> to vector<16x32xf32>
    %149 = arith.mulf %147, %148 : vector<16x32xf32>
    %150 = vector.broadcast %6 : vector<1x32xf32> to vector<16x32xf32>
    %151 = arith.addf %149, %150 : vector<16x32xf32>
    %c0_63 = arith.constant 0 : index
    %c0_64 = arith.constant 0 : index
    %152 = vector.load %arg5[%c0_63, %c0_64] : memref<32x64xf32, #tpu.memory_space<vmem>>, vector<32x64xf32>
    %cst_65 = arith.constant dense<0.000000e+00> : vector<16x64xf32>
    %153 = tpu.matmul %151, %152, %cst_65 {dimension_numbers = #tpu.dot_dimension_numbers<[1], [0], [0], [1], [0, 0, 1, 1], [], []>} : vector<16x32xf32>, vector<32x64xf32>, vector<16x64xf32> -> vector<16x64xf32>
    %154 = vector.broadcast %7 : vector<1x64xf32> to vector<16x64xf32>
    %155 = arith.addf %153, %154 : vector<16x64xf32>
    %cst_66 = arith.constant 5.000000e-01 : f32
    %156 = vector.broadcast %cst_66 : f32 to vector<16x64xf32>
    %157 = arith.mulf %156, %155 : vector<16x64xf32>
    %cst_67 = arith.constant 1.41421354 : f32
    %158 = vector.broadcast %cst_67 : f32 to vector<16x64xf32>
    %159 = arith.divf %155, %158 : vector<16x64xf32>
    %160 = math.erf %159 : vector<16x64xf32>
    %cst_68 = arith.constant 1.000000e+00 : f32
    %161 = vector.broadcast %cst_68 : f32 to vector<16x64xf32>
    %162 = arith.addf %161, %160 : vector<16x64xf32>
    %163 = arith.mulf %157, %162 : vector<16x64xf32>
    %c0_69 = arith.constant 0 : index
    %c0_70 = arith.constant 0 : index
    %164 = vector.load %arg6[%c0_69, %c0_70] : memref<64x32xf32, #tpu.memory_space<vmem>>, vector<64x32xf32>
    %cst_71 = arith.constant dense<0.000000e+00> : vector<16x32xf32>
    %165 = tpu.matmul %163, %164, %cst_71 {dimension_numbers = #tpu.dot_dimension_numbers<[1], [0], [0], [1], [0, 0, 1, 1], [], []>} : vector<16x64xf32>, vector<64x32xf32>, vector<16x32xf32> -> vector<16x32xf32>
    %166 = vector.broadcast %8 : vector<1x32xf32> to vector<16x32xf32>
    %167 = arith.addf %165, %166 : vector<16x32xf32>
    %168 = arith.addf %129, %167 : vector<16x32xf32>
    %c0_72 = arith.constant 0 : index
    %c0_73 = arith.constant 0 : index
    %169 = vector.load %arg8[%c0_72, %c0_73] : memref<16x32xf32, #tpu.memory_space<vmem>>, vector<16x32xf32>
    tpu.vector_store %arg8[%c0_72, %c0_73], %168 {strides = array<i32>} : memref<16x32xf32, #tpu.memory_space<vmem>>, vector<16x32xf32>,
    return
  }
  func.func @transform_0(%arg0: i32) -> (i32, i32) {
    %c0_i32 = arith.constant 0 : i32
    %c0_i32_0 = arith.constant 0 : i32
    %c0_i32_1 = arith.constant 0 : i32
    return %c0_i32, %c0_i32_0 : i32, i32
  }
  func.func @transform_1(%arg0: i32) -> (i32, i32, i32) {
    %c0_i32 = arith.constant 0 : i32
    %c0_i32_0 = arith.constant 0 : i32
    %c0_i32_1 = arith.constant 0 : i32
    %c0_i32_2 = arith.constant 0 : i32
    return %c0_i32, %c0_i32_0, %c0_i32_1 : i32, i32, i32
  }
  func.func @transform_2(%arg0: i32) -> (i32, i32) {
    %c0_i32 = arith.constant 0 : i32
    %c0_i32_0 = arith.constant 0 : i32
    %c0_i32_1 = arith.constant 0 : i32
    return %c0_i32, %c0_i32_0 : i32, i32
  }
  func.func @transform_3(%arg0: i32) -> (i32, i32) {
    %c0_i32 = arith.constant 0 : i32
    %c0_i32_0 = arith.constant 0 : i32
    %c0_i32_1 = arith.constant 0 : i32
    return %c0_i32, %c0_i32_0 : i32, i32
  }
  func.func @transform_4(%arg0: i32) -> (i32, i32) {
    %c0_i32 = arith.constant 0 : i32
    %c0_i32_0 = arith.constant 0 : i32
    %c0_i32_1 = arith.constant 0 : i32
    return %c0_i32, %c0_i32_0 : i32, i32
  }
  func.func @transform_5(%arg0: i32) -> (i32, i32) {
    %c0_i32 = arith.constant 0 : i32
    %c0_i32_0 = arith.constant 0 : i32
    %c0_i32_1 = arith.constant 0 : i32
    return %c0_i32, %c0_i32_0 : i32, i32
  }
  func.func @transform_6(%arg0: i32) -> (i32, i32) {
    %c0_i32 = arith.constant 0 : i32
    %c0_i32_0 = arith.constant 0 : i32
    %c0_i32_1 = arith.constant 0 : i32
    return %c0_i32, %c0_i32_0 : i32, i32
  }
  func.func @transform_7(%arg0: i32) -> (i32, i32) {
    %c0_i32 = arith.constant 0 : i32
    %c0_i32_0 = arith.constant 0 : i32
    %c0_i32_1 = arith.constant 0 : i32
    return %c0_i32, %c0_i32_0 : i32, i32
  }
}

</mosaic_0001>

<bundles_post_ra>
// kernel: tpu_custom_call.1
= control target key start
LH: loop header
LB: loop body
LE: loop exit
PB: predicated region body
PF: predicated region fallthrough
CT: control target
= control target key end

     0   :  { %12 = vsyncpa [#allocation3], 0  ;;  %s2301_s0 = inlined_call_operand.hbm [shape: f32[16,32], index: 0, kind: input, shape index: {}]   ;;  %s2302_s1 = inlined_call_operand.vmem [shape: f32[4,16,16], index: 1, kind: input, shape index: {}]   ;;  %s2303_s2 = inlined_call_operand.vmem [shape: f32[32,96], index: 2, kind: input, shape index: {}]   ;;  %s2304_s3 = inlined_call_operand.hbm [shape: f32[32,32], index: 3, kind: input, shape index: {}]   ;;  %s2305_s4 = inlined_call_operand.hbm [shape: f32[32,64], index: 4, kind: input, shape index: {}]   ;;  %s2306_s5 = inlined_call_operand.vmem [shape: f32[64,32], index: 5, kind: input, shape index: {}]   ;;  %s2307_s6 = inlined_call_operand.vmem [shape: f32[8,128], index: 6, kind: input, shape index: {}]   ;;  %s2308_s7 = inlined_call_operand.hbm [shape: f32[16,32], index: 7, kind: output, shape index: {}]  }
   0x1   :  { %13 = vsyncpa [#allocation6], 0 }
   0x2   :  { %14 = vsyncpa [#allocation4], 0  ;;  %s2000_s24 = smov [#allocation5]   ;;  %s2001_s26 = smov [#allocation2]  }
   0x3   :  { %s36_s25 = sshll.u32 %s2000_s24, 4  ;;  %s20_s27 = sshll.u32 %s2001_s26, 4  ;;  %s37_s25 = int_to_ptr.vmem [resolvable:$true] %s36_s25  ;;  %s21_s27 = int_to_ptr.vmem [resolvable:$true] %s20_s27 }
   0x4   :  { %s1922_s28 = scalar_lea.vmem %s37_s25, 512  ;;  %p1927_p1 = scmp.lt.s32.totalorder %s37_s25, %s37_s25 }
   0x5   :  { %p1923_p0 = scmp.ne.s32.totalorder %s37_s25, %s1922_s28  ;;  %p1928_p2 = scmp.lt.s32.totalorder %s1922_s28, %s1922_s28 }
   0x7   :  { %p1929_p3 = por %p1928_p2, %p1927_p1 }
   0x9   :  { %p1930_p4 = pnand %p1929_p3, %p1923_p0 }
   0xb   :  { %1933 = shalt.err (!%p1930_p4)
}
   0xc   :  { %s2002_s29 = smov 128   ;;  %s2003_s30 = smov 8  }
   0xd   :  { %42 = dma.hbm_to_vmem [thread:$0]  %s2304_s3, 512, %s37_s25, [#allocation6], %s2002_s29, %s2002_s29, %s2003_s30  }
   0xe   :  { %s1942_s10 = scalar_lea.vmem %s21_s27, 256  ;;  %p1947_p6 = scmp.lt.s32.totalorder %s21_s27, %s21_s27 }
   0xf   :  { %p1943_p5 = scmp.ne.s32.totalorder %s21_s27, %s1942_s10  ;;  %p1948_p7 = scmp.lt.s32.totalorder %s1942_s10, %s1942_s10 }
  0x11   :  { %p1949_p8 = por %p1948_p7, %p1947_p6 }
  0x13   :  { %p1950_p9 = pnand %p1949_p8, %p1943_p5 }
  0x15   :  { %1953 = shalt.err (!%p1950_p9)
}
  0x16   :  { %26 = dma.hbm_to_vmem [thread:$0]  %s2301_s0, 256, %s21_s27, [#allocation3], %s2002_s29, %s2002_s29, %s2003_s30  }
  0x17   :  { %s2004_s13 = smov [#allocation7]  }
  0x18   :  { %s48_s14 = sshll.u32 %s2004_s13, 4  ;;  %s49_s14 = int_to_ptr.vmem [resolvable:$true] %s48_s14 }
  0x19   :  { %s1962_s15 = scalar_lea.vmem %s49_s14, 512  ;;  %p1967_p11 = scmp.lt.s32.totalorder %s49_s14, %s49_s14 }
  0x1a   :  { %p1963_p10 = scmp.ne.s32.totalorder %s49_s14, %s1962_s15  ;;  %p1968_p12 = scmp.lt.s32.totalorder %s1962_s15, %s1962_s15 }
  0x1c   :  { %p1969_p13 = por %p1968_p12, %p1967_p11 }
  0x1e   :  { %p1970_p0 = pnand %p1969_p13, %p1963_p10 }
  0x20   :  { %1973 = shalt.err (!%p1970_p0)
}
  0x21   :  { %54 = dma.hbm_to_vmem [thread:$0]  %s2305_s4, 512, %s49_s14, [#allocation6], %s2002_s29, %s2002_s29, %s2003_s30  }
  0x22   :  { %1994 = dma.done.wait [#allocation3], 256  }
  0x23   :  { %1995 = vsyncadd [#allocation3], 4294967040 }
  0x24   :  { %1996 = dma.done.wait [#allocation6], 1024  }
  0x25   :  { %1997 = vsyncadd [#allocation6], 4294966272  ;;  %vm78_vm0 = vcmask 261120   ;;  %v2075_v0 = vld [vmem:[#allocation2] sm:$0xff]  ;;  %v2077_v1 = vld [vmem:[#allocation2 + $0x8] sm:$0xff]  ;;  %s2005_s28 = smov 96  }
  0x26   :  { %v79_v2 = vsel %vm78_vm0, %v2075_v0, 0.0  ;;  %v82_v3 = vsel %vm78_vm0, %v2077_v1, 0.0  ;;  %v121_v14 = vld [vmem:[%s2303_s2 + $0x18] sm:$0xff]  ;;  %v120_v15 = vld [vmem:[%s2303_s2 + $0x10] sm:$0xff]  ;;  %v119_v16 = vld [vmem:[%s2303_s2 + $0x8] sm:$0xff]  ;;  %vm221_vm1 = vcmask 64512  }
  0x27   :  { %80 = vadd.xlane.f32.xlu0 %v79_v2  ;;  %1736 = vmatprep.subr.mxu0 %v121_v14  ;;  %v118_v17 = vld [vmem:[%s2303_s2] sm:$0xff]  ;;  %v214_v43 = vld [vmem:[%s2302_s1 + $0x8] sm:$0xff]  ;;  %vm307_vm2 = vcmask 130048   ;;  %s2006_s12 = smov 64   ;;  %s2007_s13 = smov 88   ;;  %vm1514_vm3 = vcmask 523264  }
  0x28   :  { %1737 = vmatpush3.msra.mxu0 %v121_v14  ;;  %v1618_v25 = vld [vmem:[%s2307_s6] ss:$0 sm:$0xff]  ;;  %v1619_v27 = vld [vmem:[%s2307_s6 + $0x1] ss:$0 sm:$0xff]  ;;  %v1620_v34 = vld [vmem:[%s2307_s6 + $0x2] ss:$0 sm:$0xff] }
  0x29   :  { %1738 = vmatprep.subr.mxu0 %v120_v15  ;;  %v213_v45 = vld [vmem:[%s2302_s1] sm:$0xff]  ;;  %s2008_s14 = smov 120   ;;  %s2009_s15 = smov 80  }
  0x2a   :  { %1739 = vmatpush3.msra.mxu0 %v120_v15  ;;  %s2010_s3 = smov 112   ;;  %s2011_s18 = smov 56  }
  0x2b   :  { %83 = vadd.xlane.f32.xlu0 %v82_v3  ;;  %1740 = vmatprep.subr.mxu0 %v119_v16  ;;  %v417_v3 = vld [vmem:[#allocation5] sm:$0xff]  ;;  %s2012_s19 = smov 72   ;;  %s2013_s20 = smov 104  }
  0x2c   :  { %1741 = vmatpush3.msra.mxu0 %v119_v16  ;;  %s2014_s23 = smov 48  }
  0x2d   :  { %1742 = vmatprep.subr.mxu0 %v118_v17 }
  0x2e   :  { %1743 = vmatpush3.msra.mxu0 %v118_v17 }
  0xb0   :  { %v81_v4 = vpop.xlane.xlu0 %80 }
  0xb1   :  { %v86_v5 = vmul.f32 0.03125, %v81_v4 }
  0xb3   :  { %v88_v6 = vsub.f32 %v2075_v0, %v86_v5 }
  0xb4   :  { %v84_v7 = vpop.xlane.xlu0 %83 }
  0xb5   :  { %v87_v8 = vmul.f32 0.03125, %v84_v7  ;;  %v90_v9 = vmul.f32 %v88_v6, %v88_v6 }
  0xb7   :  { %v89_v10 = vsub.f32 %v2077_v1, %v87_v8  ;;  %v92_v11 = vsel %vm78_vm0, %v90_v9, 0.0 }
  0xb8   :  { %93 = vadd.xlane.f32.xlu1 %v92_v11 }
  0xb9   :  { %v91_v12 = vmul.f32 %v89_v10, %v89_v10 }
  0xbb   :  { %v95_v13 = vsel %vm78_vm0, %v91_v12, 0.0 }
  0xbc   :  { %96 = vadd.xlane.f32.xlu1 %v95_v13 }
 0x141   :  { %v94_v18 = vpop.xlane.xlu1 %93 }
 0x142   :  { %v98_v19 = vmul.f32 0.03125, %v94_v18 }
 0x144   :  { %v100_v20 = vadd.f32 1e-05, %v98_v19 }
 0x145   :  { %v97_v21 = vpop.xlane.xlu1 %96 }
 0x146   :  { %1870 = vrsqrt.f32 %v100_v20  ;;  %v99_v22 = vmul.f32 0.03125, %v97_v21  ;;  %v1633_v20 = vld [vmem:[%s2302_s1 + $0x18] sm:$0xff] }
 0x148   :  { %v101_v23 = vadd.f32 1e-05, %v99_v22  ;;  %v1632_v22 = vld [vmem:[%s2302_s1 + $0x10] sm:$0xff] }
 0x14a   :  { %1872 = vrsqrt.f32 %v101_v23 }
 0x153   :  { %v1871_v24 = vpop.eup %1870 }
 0x154   :  { %v104_v26 = vmul.f32 %v1871_v24, %v88_v6 }
 0x156   :  { %v110_v28 = vmul.f32 %v1618_v25, %v104_v26 }
 0x157   :  { %v1873_v29 = vpop.eup %1872 }
 0x158   :  { %v105_v30 = vmul.f32 %v1873_v29, %v89_v10  ;;  %v116_v31 = vadd.f32 %v1619_v27, %v110_v28  ;;  %v1643_v28 = vld [vmem:[%s2302_s1 + $0x28] sm:$0xff] }
 0x15a   :  { %v111_v32 = vmul.f32 %v1618_v25, %v105_v30  ;;  %1744 = vmatprep.mubr.msk.f32.mxu0 %vm78_vm0, %v116_v31 }
 0x15c   :  { %v117_v33 = vadd.f32 %v1619_v27, %v111_v32 }
 0x15e   :  { %1745 = vmatmul.mubr.msk.f32.vlgmr.msra.gmra.mxu0 %vm78_vm0, %v117_v33 }
 0x21e   :  { %v1746_v35 = vpop.f32.mrf.mxu0 }
 0x21f   :  { %v2110_v36 = vadd.f32 %v1746_v35, %v1620_v34 }
 0x220   :  { %v198_v37 = vpop.f32.mrf.mxu0 }
 0x221   :  { %v2112_v38 = vadd.f32 %v1620_v34, %v198_v37  ;;  %219 = vrot.lane.b32.xlu0 %v2110_v36, %s2005_s28  ;;  %v2126_v42 = vmul.f32 0.35355338, %v2110_v36 }
 0x223   :  { %217 = vrot.lane.b32.xlu1 %v2112_v38, %s2005_s28  ;;  %v2117_v39 = vmul.f32 0.35355338, %v2112_v38 }
 0x225   :  { %1751 = vmatprep.mubr.msk.f32.mxu1 %vm221_vm1, %v2117_v39 }
 0x293   :  { %v220_v40 = vpop.permute.xlu0 %219 }
 0x294   :  { %1747 = vmatprep.subr.msk.mxu1 %vm221_vm1, %v220_v40 }
 0x295   :  { %1748 = vmatpush3.xpose.msk.msra.mxu1 %vm221_vm1, %v220_v40  ;;  %v218_v41 = vpop.permute.xlu1 %217 }
 0x296   :  { %1749 = vmatprep.subr.msk.mxu1 %vm221_vm1, %v218_v41 }
 0x299   :  { %1750 = vmatpush3.xpose.msk.msra.mxu1 %vm221_vm1, %v218_v41 }
 0x29c   :  { %1752 = vmatmul.mubr.msk.f32.vlgmr.msra.gmra.mxu1 %vm221_vm1, %v2126_v42 }
 0x35c   :  { %v1753_v44 = vpop.f32.mrf.mxu1 }
 0x35d   :  { %v304_v46 = vadd.f32 %v1753_v44, %v214_v43 }
 0x35e   :  { %v298_v47 = vpop.f32.mrf.mxu1 }
 0x35f   :  { %v299_v48 = vadd.f32 %v298_v47, %v213_v45  ;;  %v311_v49 = vsel %vm307_vm2, %v304_v46, -inf }
 0x360   :  { %312 = vmax.xlane.f32.xlu0 %v311_v49 }
 0x361   :  { %v308_v50 = vsel %vm307_vm2, %v299_v48, -inf }
 0x362   :  { %309 = vmax.xlane.f32.xlu1 %v308_v50 }
 0x3e9   :  { %v313_v51 = vpop.xlane.xlu0 %312 }
 0x3ea   :  { %v315_v52 = vsub.f32 %v304_v46, %v313_v51 }
 0x3eb   :  { %v310_v53 = vpop.xlane.xlu1 %309 }
 0x3ec   :  { %v318_v54 = vmul.f32 1.442695, %v315_v52  ;;  %v314_v55 = vsub.f32 %v299_v48, %v310_v53  ;;  %v1642_v53 = vld [vmem:[%s2302_s1 + $0x20] sm:$0xff] }
 0x3ee   :  { %1874 = vpow2.f32 %v318_v54  ;;  %v316_v56 = vmul.f32 1.442695, %v314_v55 }
 0x3f0   :  { %1876 = vpow2.f32 %v316_v56 }
 0x3fb   :  { %v1875_v57 = vpop.eup %1874 }
 0x3fc   :  { %v323_v58 = vsel %vm307_vm2, %v1875_v57, 0.0 }
 0x3fd   :  { %v1877_v59 = vpop.eup %1876  ;;  %324 = vadd.xlane.f32.xlu1 %v323_v58 }
 0x3fe   :  { %v320_v60 = vsel %vm307_vm2, %v1877_v59, 0.0 }
 0x3ff   :  { %321 = vadd.xlane.f32.xlu0 %v320_v60 }
 0x40e   :  { %330 = vrot.lane.b32.xlu1 %v2112_v38, %s2006_s12 }
 0x412   :  { %510 = vrot.lane.b32.xlu1 %v2110_v36, %s2007_s13 }
 0x415   :  { %332 = vrot.lane.b32.xlu0 %v2110_v36, %s2006_s12 }
 0x416   :  { %508 = vrot.lane.b32.xlu1 %v2112_v38, %s2007_s13 }
 0x419   :  { %504 = vrot.lane.b32.xlu0 %v2117_v39, %s2008_s14 }
 0x41a   :  { %506 = vrot.lane.b32.xlu1 %v2126_v42, %s2008_s14 }
 0x41d   :  { %797 = vrot.lane.b32.xlu0 %v2110_v36, %s2009_s15 }
 0x41e   :  { %795 = vrot.lane.b32.xlu1 %v2112_v38, %s2009_s15 }
 0x421   :  { %791 = vrot.lane.b32.xlu0 %v2117_v39, %s2010_s3 }
 0x422   :  { %793 = vrot.lane.b32.xlu1 %v2126_v42, %s2010_s3 }
 0x486   :  { %v325_v61 = vpop.xlane.xlu1 %324 }
 0x487   :  { %1878 = vrcp.f32 %v325_v61 }
 0x488   :  { %v322_v62 = vpop.xlane.xlu0 %321 }
 0x489   :  { %1880 = vrcp.f32 %v322_v62 }
 0x48a   :  { %v331_v2 = vpop.permute.xlu1 %330 }
 0x48c   :  { %v333_v63 = vpop.permute.xlu0 %332 }
 0x48d   :  { %1754 = vmatprep.subr.mxu0 %v333_v63 }
 0x48e   :  { %1755 = vmatpush3.msra.mxu0 %v333_v63  ;;  %v511_v8 = vpop.permute.xlu1 %510 }
 0x48f   :  { %1756 = vmatprep.subr.mxu0 %v331_v2 }
 0x490   :  { %1757 = vmatpush3.msra.mxu0 %v331_v2  ;;  %v505_v9 = vpop.permute.xlu0 %504 }
 0x491   :  { %1761 = vmatprep.subr.mxu0 %v417_v3 }
 0x492   :  { %v509_v11 = vpop.permute.xlu1 %508 }
 0x494   :  { %v1879_v4 = vpop.eup %1878  ;;  %v798_v13 = vpop.permute.xlu0 %797 }
 0x495   :  { %v329_v7 = vmul.f32 %v1879_v4, %v1875_v57 }
 0x496   :  { %v1881_v5 = vpop.eup %1880  ;;  %v507_v14 = vpop.permute.xlu1 %506 }
 0x497   :  { %v328_v6 = vmul.f32 %v1881_v5, %v1877_v59 }
 0x498   :  { %v792_v15 = vpop.permute.xlu0 %791 }
 0x499   :  { %1758 = vmatprep.mubr.msk.f32.mxu0 %vm307_vm2, %v328_v6 }
 0x49a   :  { %1759 = vmatmul.mubr.msk.f32.vlgmr.msra.gmra.mxu0 %vm307_vm2, %v329_v7  ;;  %v796_v16 = vpop.permute.xlu1 %795 }
 0x49b   :  { %1762 = vmatpush3.msra.mxu0 %v417_v3 }
 0x49c   :  { %1766 = vmatprep.subr.msk.mxu0 %vm221_vm1, %v511_v8 }
 0x49e   :  { %v794_v17 = vpop.permute.xlu1 %793 }
 0x55a   :  { %v1760_v10 = vpop.f32.mrf.mxu0 }
 0x55c   :  { %v408_v12 = vpop.f32.mrf.mxu0 }
 0x55d   :  { %1763 = vmatprep.mubr.msk.f32.mxu0 %vm221_vm1, %v408_v12 }
 0x55e   :  { %1764 = vmatmul.mubr.msk.f32.vlgmr.msra.gmra.mxu0 %vm221_vm1, %v1760_v10 }
 0x55f   :  { %1767 = vmatpush3.xpose.msk.msra.mxu0 %vm221_vm1, %v511_v8  ;;  %1770 = vmatprep.mubr.msk.f32.mxu0 %vm221_vm1, %v505_v9  ;;  %v704_v8 = vld [vmem:[#allocation5 + $0x8] sm:$0xff] }
 0x560   :  { %1768 = vmatprep.subr.msk.mxu0 %vm221_vm1, %v509_v11  ;;  %v1653_v9 = vld [vmem:[%s2302_s1 + $0x38] sm:$0xff] }
 0x563   :  { %1769 = vmatpush3.xpose.msk.msra.mxu0 %vm221_vm1, %v509_v11  ;;  %v1652_v11 = vld [vmem:[%s2302_s1 + $0x30] sm:$0xff]  ;;  %s2015_s1 = smov 40  }
 0x564   :  { %1785 = vmatprep.subr.msk.mxu0 %vm221_vm1, %v798_v13 }
 0x566   :  { %1771 = vmatmul.mubr.msk.f32.vlgmr.msra.gmra.mxu0 %vm221_vm1, %v507_v14 }
 0x567   :  { %1786 = vmatpush3.xpose.msk.msra.mxu0 %vm221_vm1, %v798_v13  ;;  %1789 = vmatprep.mubr.msk.f32.mxu0 %vm221_vm1, %v792_v15 }
 0x568   :  { %1787 = vmatprep.subr.msk.mxu0 %vm221_vm1, %v796_v16 }
 0x56b   :  { %1788 = vmatpush3.xpose.msk.msra.mxu0 %vm221_vm1, %v796_v16 }
 0x56e   :  { %1790 = vmatmul.mubr.msk.f32.vlgmr.msra.gmra.mxu0 %vm221_vm1, %v794_v17 }
 0x61e   :  { %v2166_v18 = vpop.f32.mrf.mxu0 }
 0x620   :  { %v2168_v19 = vpop.f32.mrf.mxu0 }
 0x626   :  { %v1772_v21 = vpop.f32.mrf.mxu0 }
 0x627   :  { %v592_v23 = vadd.f32 %v1772_v21, %v1633_v20 }
 0x628   :  { %v586_v24 = vpop.f32.mrf.mxu0 }
 0x629   :  { %v587_v25 = vadd.f32 %v1632_v22, %v586_v24  ;;  %v598_v26 = vsel %vm307_vm2, %v592_v23, -inf }
 0x62a   :  { %599 = vmax.xlane.f32.xlu1 %v598_v26 }
 0x62b   :  { %v595_v27 = vsel %vm307_vm2, %v587_v25, -inf }
 0x62c   :  { %596 = vmax.xlane.f32.xlu0 %v595_v27 }
 0x62e   :  { %v1791_v29 = vpop.f32.mrf.mxu0 }
 0x62f   :  { %v879_v30 = vadd.f32 %v1791_v29, %v1643_v28  ;;  %v991_v29 = vld [vmem:[#allocation5 + $0x10] sm:$0xff] }
 0x630   :  { %v873_v52 = vpop.f32.mrf.mxu0 }
 0x631   :  { %v885_v31 = vsel %vm307_vm2, %v879_v30, -inf  ;;  %v874_v54 = vadd.f32 %v1642_v53, %v873_v52 }
 0x633   :  { %v882_v55 = vsel %vm307_vm2, %v874_v54, -inf }
 0x63b   :  { %617 = vrot.lane.b32.xlu1 %v2112_v38, %s2011_s18 }
 0x63f   :  { %1084 = vrot.lane.b32.xlu1 %v2110_v36, %s2012_s19 }
 0x643   :  { %1082 = vrot.lane.b32.xlu1 %v2112_v38, %s2012_s19 }
 0x647   :  { %1080 = vrot.lane.b32.xlu1 %v2126_v42, %s2013_s20 }
 0x66b   :  { %886 = vmax.xlane.f32.xlu1 %v885_v31 }
 0x67c   :  { %904 = vrot.lane.b32.xlu1 %v2112_v38, %s2014_s23 }
 0x6b3   :  { %v600_v32 = vpop.xlane.xlu1 %599 }
 0x6b4   :  { %v602_v33 = vsub.f32 %v592_v23, %v600_v32 }
 0x6b5   :  { %v597_v34 = vpop.xlane.xlu0 %596 }
 0x6b6   :  { %v605_v35 = vmul.f32 1.442695, %v602_v33  ;;  %v601_v37 = vsub.f32 %v587_v25, %v597_v34 }
 0x6b7   :  { %v618_v40 = vpop.permute.xlu1 %617 }
 0x6b8   :  { %1882 = vpow2.f32 %v605_v35  ;;  %v603_v41 = vmul.f32 1.442695, %v601_v37 }
 0x6ba   :  { %1884 = vpow2.f32 %v603_v41 }
 0x6bb   :  { %v1085_v42 = vpop.permute.xlu1 %1084 }
 0x6bc   :  { %1804 = vmatprep.subr.msk.mxu0 %vm221_vm1, %v1085_v42 }
 0x6bd   :  { %1805 = vmatpush3.xpose.msk.msra.mxu0 %vm221_vm1, %v1085_v42 }
 0x6bf   :  { %v1083_v43 = vpop.permute.xlu1 %1082 }
 0x6c0   :  { %1806 = vmatprep.subr.msk.mxu0 %vm221_vm1, %v1083_v43 }
 0x6c1   :  { %1807 = vmatpush3.xpose.msk.msra.mxu0 %vm221_vm1, %v1083_v43  ;;  %v1623_v43 = vld [vmem:[%s2307_s6 + $0x3] ss:$0 sm:$0xff] }
 0x6c3   :  { %v1081_v48 = vpop.permute.xlu1 %1080 }
 0x6c5   :  { %v1883_v44 = vpop.eup %1882 }
 0x6c6   :  { %v610_v45 = vsel %vm307_vm2, %v1883_v44, 0.0 }
 0x6c7   :  { %v1885_v46 = vpop.eup %1884  ;;  %611 = vadd.xlane.f32.xlu0 %v610_v45 }
 0x6c8   :  { %v607_v47 = vsel %vm307_vm2, %v1885_v46, 0.0 }
 0x6cb   :  { %608 = vadd.xlane.f32.xlu0 %v607_v47 }
 0x6e1   :  { %619 = vrot.lane.b32.xlu0 %v2110_v36, %s2011_s18 }
 0x6e5   :  { %1078 = vrot.lane.b32.xlu0 %v2117_v39, %s2013_s20 }
 0x6f4   :  { %v887_v49 = vpop.xlane.xlu1 %886 }
 0x6f5   :  { %v889_v50 = vsub.f32 %v879_v30, %v887_v49 }
 0x6f7   :  { %v892_v51 = vmul.f32 1.442695, %v889_v50 }
 0x6f8   :  { %v905_v24 = vpop.permute.xlu1 %904 }
 0x6f9   :  { %1886 = vpow2.f32 %v892_v51 }
 0x704   :  { %883 = vmax.xlane.f32.xlu0 %v882_v55 }
 0x706   :  { %v1887_v56 = vpop.eup %1886 }
 0x707   :  { %v897_v57 = vsel %vm307_vm2, %v1887_v56, 0.0 }
 0x708   :  { %898 = vadd.xlane.f32.xlu0 %v897_v57 }
 0x750   :  { %v612_v58 = vpop.xlane.xlu0 %611 }
 0x751   :  { %1888 = vrcp.f32 %v612_v58 }
 0x754   :  { %v609_v39 = vpop.xlane.xlu0 %608 }
 0x755   :  { %1890 = vrcp.f32 %v609_v39 }
 0x758   :  { %v620_v59 = vpop.permute.xlu0 %619 }
 0x759   :  { %1773 = vmatprep.subr.mxu1 %v620_v59 }
 0x75a   :  { %1774 = vmatpush3.msra.mxu1 %v620_v59 }
 0x75b   :  { %1775 = vmatprep.subr.mxu1 %v618_v40 }
 0x75c   :  { %v1079_v60 = vpop.permute.xlu0 %1078  ;;  %1776 = vmatpush3.msra.mxu1 %v618_v40 }
 0x75d   :  { %1808 = vmatprep.mubr.msk.f32.mxu0 %vm221_vm1, %v1079_v60  ;;  %1780 = vmatprep.subr.mxu1 %v704_v8 }
 0x75e   :  { %1809 = vmatmul.mubr.msk.f32.vlgmr.msra.gmra.mxu0 %vm221_vm1, %v1081_v48  ;;  %v1889_v61 = vpop.eup %1888 }
 0x75f   :  { %v616_v2 = vmul.f32 %v1889_v61, %v1883_v44  ;;  %v500_v44 = vadd.f32 %v2166_v18, %v1623_v43  ;;  %v1278_v18 = vld [vmem:[#allocation5 + $0x18] sm:$0xff] }
 0x762   :  { %v1891_v62 = vpop.eup %1890 }
 0x763   :  { %v615_v63 = vmul.f32 %v1891_v62, %v1885_v46  ;;  %v499_v46 = vadd.f32 %v1623_v43, %v2168_v19  ;;  %v1507_v43 = vld [vmem:[%s2306_s5 + $0x28] sm:$0xff] }
 0x765   :  { %1777 = vmatprep.mubr.msk.f32.mxu1 %vm307_vm2, %v615_v63 }
 0x766   :  { %1778 = vmatmul.mubr.msk.f32.vlgmr.msra.gmra.mxu1 %vm307_vm2, %v616_v2 }
 0x767   :  { %1781 = vmatpush3.msra.mxu1 %v704_v8 }
 0x78d   :  { %v884_v3 = vpop.xlane.xlu0 %883 }
 0x78e   :  { %v888_v4 = vsub.f32 %v874_v54, %v884_v3 }
 0x790   :  { %v890_v5 = vmul.f32 1.442695, %v888_v4 }
 0x791   :  { %v899_v17 = vpop.xlane.xlu0 %898 }
 0x792   :  { %1892 = vpow2.f32 %v890_v5 }
 0x793   :  { %1894 = vrcp.f32 %v899_v17  ;;  %v1404_v17 = vld [vmem:[#allocation7 + $0x10] sm:$0xff] }
 0x79f   :  { %v1893_v6 = vpop.eup %1892 }
 0x7a0   :  { %v894_v7 = vsel %vm307_vm2, %v1893_v6, 0.0  ;;  %v1895_v25 = vpop.eup %1894 }
 0x7a1   :  { %895 = vadd.xlane.f32.xlu0 %v894_v7  ;;  %v903_v28 = vmul.f32 %v1895_v25, %v1887_v56 }
 0x7b7   :  { %906 = vrot.lane.b32.xlu0 %v2110_v36, %s2014_s23 }
 0x81e   :  { %v1810_v10 = vpop.f32.mrf.mxu0 }
 0x81f   :  { %v1166_v12 = vadd.f32 %v1810_v10, %v1653_v9 }
 0x820   :  { %v1160_v13 = vpop.f32.mrf.mxu0 }
 0x821   :  { %v1161_v14 = vadd.f32 %v1652_v11, %v1160_v13  ;;  %v1172_v15 = vsel %vm307_vm2, %v1166_v12, -inf }
 0x822   :  { %1173 = vmax.xlane.f32.xlu0 %v1172_v15 }
 0x823   :  { %v1169_v16 = vsel %vm307_vm2, %v1161_v14, -inf }
 0x824   :  { %1170 = vmax.xlane.f32.xlu1 %v1169_v16  ;;  %v1405_v16 = vld [vmem:[#allocation7 + $0x18] sm:$0xff] }
 0x825   :  { %1823 = vmatprep.subr.mxu0 %v1405_v16 }
 0x826   :  { %v1779_v20 = vpop.f32.mrf.mxu1  ;;  %1824 = vmatpush3.msra.mxu0 %v1405_v16 }
 0x827   :  { %1825 = vmatprep.subr.mxu0 %v1404_v17 }
 0x828   :  { %v695_v21 = vpop.f32.mrf.mxu1  ;;  %1826 = vmatpush3.msra.mxu0 %v1404_v17 }
 0x829   :  { %1782 = vmatprep.mubr.msk.f32.mxu1 %vm221_vm1, %v695_v21  ;;  %v1402_v21 = vld [vmem:[#allocation7] sm:$0xff] }
 0x82a   :  { %1783 = vmatmul.mubr.msk.f32.vlgmr.msra.gmra.mxu1 %vm221_vm1, %v1779_v20  ;;  %v896_v22 = vpop.xlane.xlu0 %895  ;;  %v1403_v20 = vld [vmem:[#allocation7 + $0x8] sm:$0xff] }
 0x82b   :  { %1896 = vrcp.f32 %v896_v22  ;;  %1827 = vmatprep.subr.mxu0 %v1403_v20 }
 0x82c   :  { %1828 = vmatpush3.msra.mxu0 %v1403_v20 }
 0x82d   :  { %1829 = vmatprep.subr.mxu0 %v1402_v21 }
 0x82e   :  { %v907_v23 = vpop.permute.xlu0 %906  ;;  %1830 = vmatpush3.msra.mxu0 %v1402_v21 }
 0x82f   :  { %1792 = vmatprep.subr.mxu1 %v907_v23 }
 0x830   :  { %1793 = vmatpush3.msra.mxu1 %v907_v23 }
 0x831   :  { %1794 = vmatprep.subr.mxu1 %v905_v24 }
 0x832   :  { %1795 = vmatpush3.msra.mxu1 %v905_v24 }
 0x833   :  { %1799 = vmatprep.subr.mxu1 %v991_v29 }
 0x838   :  { %v1897_v26 = vpop.eup %1896 }
 0x839   :  { %v902_v27 = vmul.f32 %v1897_v26, %v1893_v6 }
 0x83b   :  { %1796 = vmatprep.mubr.msk.f32.mxu1 %vm307_vm2, %v902_v27 }
 0x83c   :  { %1797 = vmatmul.mubr.msk.f32.vlgmr.msra.gmra.mxu1 %vm307_vm2, %v903_v28 }
 0x83d   :  { %1800 = vmatpush3.msra.mxu1 %v991_v29  ;;  %v1662_v29 = vld [vmem:[%s2307_s6 + $0x4] ss:$0 sm:$0xff] }
 0x8ab   :  { %v1174_v30 = vpop.xlane.xlu0 %1173 }
 0x8ac   :  { %v1176_v31 = vsub.f32 %v1166_v12, %v1174_v30 }
 0x8ad   :  { %v1171_v32 = vpop.xlane.xlu1 %1170 }
 0x8ae   :  { %v1179_v33 = vmul.f32 1.442695, %v1176_v31  ;;  %v1175_v34 = vsub.f32 %v1161_v14, %v1171_v32 }
 0x8b0   :  { %1898 = vpow2.f32 %v1179_v33  ;;  %v1177_v35 = vmul.f32 1.442695, %v1175_v34  ;;  %v1663_v34 = vld [vmem:[%s2307_s6 + $0x5] ss:$0 sm:$0xff] }
 0x8b2   :  { %1900 = vpow2.f32 %v1177_v35 }
 0x8bd   :  { %v1899_v37 = vpop.eup %1898 }
 0x8be   :  { %v1184_v40 = vsel %vm307_vm2, %v1899_v37, 0.0 }
 0x8bf   :  { %v1901_v41 = vpop.eup %1900  ;;  %1185 = vadd.xlane.f32.xlu1 %v1184_v40 }
 0x8c0   :  { %v1181_v42 = vsel %vm307_vm2, %v1901_v41, 0.0 }
 0x8c1   :  { %1182 = vadd.xlane.f32.xlu0 %v1181_v42  ;;  %v1508_v42 = vld [vmem:[%s2306_s5 + $0x30] sm:$0xff] }
 0x8d0   :  { %1191 = vrot.lane.b32.xlu1 %v2112_v38, %s2015_s1 }
 0x8d7   :  { %1193 = vrot.lane.b32.xlu0 %v2110_v36, %s2015_s1  ;;  %s2016_s1 = smov [#allocation8]  }
 0x8d8   :  { %s1605_s8 = sshll.u32 %s2016_s1, 4  ;;  %s1606_s8 = int_to_ptr.vmem [resolvable:$true] %s1605_s8 }
 0x8d9   :  { %s1974_s9 = scalar_lea.vmem %s1606_s8, 256  ;;  %p1979_p2 = scmp.lt.s32.totalorder %s1606_s8, %s1606_s8 }
 0x8da   :  { %p1975_p1 = scmp.ne.s32.totalorder %s1606_s8, %s1974_s9  ;;  %p1980_p3 = scmp.lt.s32.totalorder %s1974_s9, %s1974_s9 }
 0x8dc   :  { %p1981_p4 = por %p1980_p3, %p1979_p2 }
 0x8de   :  { %p1982_p5 = pnand %p1981_p4, %p1975_p1 }
 0x8ea   :  { %v1784_v45 = vpop.f32.mrf.mxu1 }
 0x8eb   :  { %v787_v47 = vadd.f32 %v1784_v45, %v500_v44  ;;  %v1506_v44 = vld [vmem:[%s2306_s5 + $0x20] sm:$0xff]  ;;  %v1505_v45 = vld [vmem:[%s2306_s5 + $0x18] sm:$0xff] }
 0x8ec   :  { %v777_v48 = vpop.f32.mrf.mxu1 }
 0x8ed   :  { %v786_v49 = vadd.f32 %v777_v48, %v499_v46  ;;  %v1504_v46 = vld [vmem:[%s2306_s5 + $0x10] sm:$0xff]  ;;  %v1502_v48 = vld [vmem:[%s2306_s5] sm:$0xff] }
 0x8fc   :  { %v1798_v50 = vpop.f32.mrf.mxu1 }
 0x8fe   :  { %v982_v51 = vpop.f32.mrf.mxu1 }
 0x8ff   :  { %1801 = vmatprep.mubr.msk.f32.mxu1 %vm221_vm1, %v982_v51 }
 0x900   :  { %1802 = vmatmul.mubr.msk.f32.vlgmr.msra.gmra.mxu1 %vm221_vm1, %v1798_v50 }
 0x948   :  { %v1186_v38 = vpop.xlane.xlu1 %1185 }
 0x949   :  { %1902 = vrcp.f32 %v1186_v38 }
 0x94a   :  { %v1183_v36 = vpop.xlane.xlu0 %1182 }
 0x94b   :  { %1904 = vrcp.f32 %v1183_v36 }
 0x94c   :  { %v1192_v53 = vpop.permute.xlu1 %1191 }
 0x94e   :  { %v1194_v52 = vpop.permute.xlu0 %1193 }
 0x94f   :  { %1811 = vmatprep.subr.mxu1 %v1194_v52 }
 0x950   :  { %1812 = vmatpush3.msra.mxu1 %v1194_v52 }
 0x951   :  { %1813 = vmatprep.subr.mxu1 %v1192_v53 }
 0x952   :  { %1814 = vmatpush3.msra.mxu1 %v1192_v53 }
 0x953   :  { %1818 = vmatprep.subr.mxu1 %v1278_v18 }
 0x956   :  { %v1903_v19 = vpop.eup %1902 }
 0x957   :  { %v1190_v56 = vmul.f32 %v1903_v19, %v1899_v37 }
 0x958   :  { %v1905_v54 = vpop.eup %1904 }
 0x959   :  { %v1189_v55 = vmul.f32 %v1905_v54, %v1901_v41  ;;  %v1509_v41 = vld [vmem:[%s2306_s5 + $0x38] sm:$0xff] }
 0x95b   :  { %1815 = vmatprep.mubr.msk.f32.mxu1 %vm307_vm2, %v1189_v55 }
 0x95c   :  { %1816 = vmatmul.mubr.msk.f32.vlgmr.msra.gmra.mxu1 %vm307_vm2, %v1190_v56 }
 0x95d   :  { %1819 = vmatpush3.msra.mxu1 %v1278_v18 }
 0x95e   :  { %1834 = vmatprep.subr.mxu1 %v1509_v41 }
 0x9c0   :  { %v1803_v57 = vpop.f32.mrf.mxu1 }
 0x9c1   :  { %v1074_v58 = vadd.f32 %v1803_v57, %v787_v47  ;;  %v1503_v47 = vld [vmem:[%s2306_s5 + $0x8] sm:$0xff] }
 0x9c2   :  { %v1064_v39 = vpop.f32.mrf.mxu1 }
 0x9c3   :  { %v1073_v62 = vadd.f32 %v1064_v39, %v786_v49  ;;  %v1664_v49 = vld [vmem:[%s2307_s6 + $0x6] ss:$0 sm:$0xff] }
 0xa1c   :  { %v1817_v59 = vpop.f32.mrf.mxu1 }
 0xa1e   :  { %v1269_v60 = vpop.f32.mrf.mxu1 }
 0xa1f   :  { %1820 = vmatprep.mubr.msk.f32.mxu1 %vm221_vm1, %v1269_v60 }
 0xa20   :  { %1821 = vmatmul.mubr.msk.f32.vlgmr.msra.gmra.mxu1 %vm221_vm1, %v1817_v59  ;;  %v1667_v59 = vld [vmem:[%s2307_s6 + $0x7] ss:$0 sm:$0xff] }
 0xa21   :  { %1835 = vmatpush3.msra.mxu1 %v1509_v41 }
 0xa22   :  { %1836 = vmatprep.subr.mxu1 %v1508_v42 }
 0xa23   :  { %1837 = vmatpush3.msra.mxu1 %v1508_v42 }
 0xa24   :  { %1838 = vmatprep.subr.mxu1 %v1507_v43 }
 0xa25   :  { %1839 = vmatpush3.msra.mxu1 %v1507_v43 }
 0xa26   :  { %1840 = vmatprep.subr.mxu1 %v1506_v44 }
 0xa27   :  { %1841 = vmatpush3.msra.mxu1 %v1506_v44 }
 0xa28   :  { %1842 = vmatprep.subr.mxu1 %v1505_v45 }
 0xa29   :  { %1843 = vmatpush3.msra.mxu1 %v1505_v45 }
 0xa2a   :  { %1844 = vmatprep.subr.mxu1 %v1504_v46 }
 0xa2b   :  { %1845 = vmatpush3.msra.mxu1 %v1504_v46 }
 0xa2c   :  { %1846 = vmatprep.subr.mxu1 %v1503_v47 }
 0xa2d   :  { %1847 = vmatpush3.msra.mxu1 %v1503_v47 }
 0xa2e   :  { %1848 = vmatprep.subr.mxu1 %v1502_v48 }
 0xa2f   :  { %1849 = vmatpush3.msra.mxu1 %v1502_v48 }
 0xae0   :  { %v1822_v61 = vpop.f32.mrf.mxu1 }
 0xae1   :  { %v1361_v63 = vadd.f32 %v1822_v61, %v1074_v58 }
 0xae2   :  { %v1351_v2 = vpop.f32.mrf.mxu1 }
 0xae3   :  { %v2240_v3 = vadd.f32 %v1361_v63, %v2077_v1  ;;  %v1360_v4 = vadd.f32 %v1351_v2, %v1073_v62 }
 0xae5   :  { %v2243_v5 = vadd.f32 %v1360_v4, %v2075_v0  ;;  %v1367_v6 = vsel %vm78_vm0, %v2240_v3, 0.0 }
 0xae6   :  { %1368 = vadd.xlane.f32.xlu0 %v1367_v6 }
 0xae7   :  { %v1364_v7 = vsel %vm78_vm0, %v2243_v5, 0.0 }
 0xae8   :  { %1365 = vadd.xlane.f32.xlu1 %v1364_v7 }
 0xb6f   :  { %v1369_v8 = vpop.xlane.xlu0 %1368 }
 0xb70   :  { %v1371_v9 = vmul.f32 0.03125, %v1369_v8 }
 0xb71   :  { %v1366_v10 = vpop.xlane.xlu1 %1365 }
 0xb72   :  { %v1373_v11 = vsub.f32 %v2240_v3, %v1371_v9  ;;  %v1370_v12 = vmul.f32 0.03125, %v1366_v10 }
 0xb74   :  { %v1372_v1 = vsub.f32 %v2243_v5, %v1370_v12  ;;  %v1375_v13 = vmul.f32 %v1373_v11, %v1373_v11 }
 0xb76   :  { %v1379_v0 = vsel %vm78_vm0, %v1375_v13, 0.0  ;;  %v1374_v14 = vmul.f32 %v1372_v1, %v1372_v1 }
 0xb77   :  { %1380 = vadd.xlane.f32.xlu1 %v1379_v0 }
 0xb78   :  { %v1376_v15 = vsel %vm78_vm0, %v1374_v14, 0.0 }
 0xb79   :  { %1377 = vadd.xlane.f32.xlu0 %v1376_v15 }
 0xc00   :  { %v1381_v22 = vpop.xlane.xlu1 %1380 }
 0xc01   :  { %v1383_v23 = vmul.f32 0.03125, %v1381_v22 }
 0xc02   :  { %v1378_v24 = vpop.xlane.xlu0 %1377 }
 0xc03   :  { %v1385_v25 = vadd.f32 1e-05, %v1383_v23  ;;  %v1382_v26 = vmul.f32 0.03125, %v1378_v24 }
 0xc05   :  { %1906 = vrsqrt.f32 %v1385_v25  ;;  %v1384_v27 = vadd.f32 1e-05, %v1382_v26 }
 0xc07   :  { %1908 = vrsqrt.f32 %v1384_v27 }
 0xc12   :  { %v1907_v28 = vpop.eup %1906 }
 0xc13   :  { %v1389_v30 = vmul.f32 %v1907_v28, %v1373_v11 }
 0xc14   :  { %v1909_v31 = vpop.eup %1908 }
 0xc15   :  { %v1388_v32 = vmul.f32 %v1909_v31, %v1372_v1  ;;  %v1395_v33 = vmul.f32 %v1662_v29, %v1389_v30 }
 0xc17   :  { %v1394_v35 = vmul.f32 %v1662_v29, %v1388_v32  ;;  %v1401_v40 = vadd.f32 %v1663_v34, %v1395_v33 }
 0xc19   :  { %v1400_v37 = vadd.f32 %v1663_v34, %v1394_v35 }
 0xc1b   :  { %1831 = vmatprep.mubr.msk.f32.mxu0 %vm78_vm0, %v1400_v37 }
 0xc1c   :  { %1832 = vmatmul.mubr.msk.f32.vlgmr.msra.gmra.mxu0 %vm78_vm0, %v1401_v40 }
 0xcdc   :  { %v1833_v50 = vpop.f32.mrf.mxu0 }
 0xcdd   :  { %v1488_v51 = vadd.f32 %v1833_v50, %v1664_v49 }
 0xcde   :  { %v1482_v38 = vpop.f32.mrf.mxu0 }
 0xcdf   :  { %v1495_v36 = vmul.f32 0.70710677, %v1488_v51  ;;  %v1483_v52 = vadd.f32 %v1664_v49, %v1482_v38  ;;  %v1492_v57 = vmul.f32 0.5, %v1488_v51 }
 0xce1   :  { %1910 = verf.f32 %v1495_v36  ;;  %v1494_v53 = vmul.f32 0.70710677, %v1483_v52  ;;  %v1491_v55 = vmul.f32 0.5, %v1483_v52 }
 0xce3   :  { %1912 = verf.f32 %v1494_v53 }
 0xcee   :  { %v1911_v18 = vpop.eup %1910 }
 0xcef   :  { %v1499_v54 = vadd.f32 1.0, %v1911_v18 }
 0xcf0   :  { %v1913_v19 = vpop.eup %1912 }
 0xcf1   :  { %v1498_v56 = vadd.f32 1.0, %v1913_v19  ;;  %v1501_v39 = vmul.f32 %v1499_v54, %v1492_v57 }
 0xcf3   :  { %v1500_v58 = vmul.f32 %v1498_v56, %v1491_v55 }
 0xcf5   :  { %1850 = vmatprep.mubr.msk.f32.mxu1 %vm1514_vm3, %v1500_v58 }
 0xcf6   :  { %1851 = vmatmul.mubr.msk.f32.vlgmr.msra.gmra.mxu1 %vm1514_vm3, %v1501_v39 }
 0xdb6   :  { %v1852_v60 = vpop.f32.mrf.mxu1 }
 0xdb7   :  { %v1593_v61 = vadd.f32 %v1852_v60, %v1667_v59 }
 0xdb8   :  { %v1587_v62 = vpop.f32.mrf.mxu1 }
 0xdb9   :  { %v1597_v63 = vadd.f32 %v1593_v61, %v2240_v3  ;;  %v1588_v2 = vadd.f32 %v1667_v59, %v1587_v62 }
 0xdbb   :  { %1599 = vst.msk [vmem:[#allocation8 + $0x8] sm:$0xff] %vm78_vm0, %v1597_v63  ;;  %v1596_v4 = vadd.f32 %v1588_v2, %v2243_v5 }
 0xdbd   :  { %1598 = vst.msk [vmem:[#allocation8] sm:$0xff] %vm78_vm0, %v1596_v4 }
 0xdbe   :  { %1985 = shalt.err (!%p1982_p5)
}
 0xdbf   :  { %1611 = dma.vmem_to_hbm [thread:$0]  %s1606_s8, 256, %s2308_s7, [#allocation4], %s2002_s29, %s2002_s29, %s2003_s30  }
 0xdc0   :  { %1998 = dma.done.wait [#allocation4], 256  }
 0xdc1   :  { %1999 = vsyncadd [#allocation4], 4294967040 }
 0xdc2   :  { %1615 = vsyncpa [#allocation3], 1 }
 0xdc3   :  { %1616 = vsyncpa [#allocation6], 1 }
 0xdc4   :  { %1617 = vsyncpa [#allocation4], 1 }

</bundles_post_ra>
